<compile_context>
chip_gen: v6e
topology: v6e:2x2x1
jax: 0.10.0
libtpu: 0.0.40
codegen_flags: <defaults>
</compile_context>

<pallas_src>
import functools

import jax
import jax.numpy as jnp
from jax.experimental import pallas as pl
from jax.experimental.pallas import tpu as pltpu


def _round_up(x, m):
    return ((x + m - 1) // m) * m


def mlp_kernel(x_ref, w1_ref, b1_ref, w2_ref, b2_ref, o_ref):
    # x: (TB, d_in), w1: (d_in, d_h), b1: (1, d_h) f32,
    # w2: (d_h, d_out), b2: (1, d_out) f32, o: (TB, d_out) f32.
    x = x_ref[...]
    # MXU matmul with f32 accumulation; bias fused onto the accumulator.
    h = jnp.dot(x, w1_ref[...], preferred_element_type=jnp.float32) + b1_ref[...]
    h = jnp.maximum(h, 0.0)                                  # ReLU on the VPU (f32)
    y = jnp.dot(h.astype(w2_ref.dtype), w2_ref[...],
                preferred_element_type=jnp.float32) + b2_ref[...]
    o_ref[...] = y.astype(o_ref.dtype)


@functools.partial(jax.jit, static_argnames=("max_tile", "use_bf16"))
def mlp_forward(x, w1, b1, w2, b2, *, max_tile=4096, use_bf16=False):
    """x: (B, d_in); w1: (d_in, 32); b1: (1, 32); w2: (32, d_out); b2: (1, d_out)."""
    B, d_in = x.shape
    d_hidden = w1.shape[1]
    d_out = w2.shape[1]

    # Batch only padded to a multiple of 8 sublanes (cheap); last grid block may
    # be partial instead of rounding B up to a full tile.
    b8 = _round_up(B, 8)
    # Tile choice: at most max_tile, at least 2 grid steps for mid/large batches
    # (v7x megacore), never larger than the batch itself.
    tb = max(512, _round_up(pl.cdiv(b8, 2), 8))
    tb = min(tb, max_tile, b8)
    grid = (pl.cdiv(b8, tb),)

    in_dtype = jnp.bfloat16 if use_bf16 else jnp.float32
    xk = x.astype(in_dtype)
    if b8 != B:
        xk = jnp.pad(xk, ((0, b8 - B), (0, 0)))
    w1k = w1.astype(in_dtype)
    w2k = w2.astype(in_dtype)
    b1k = b1.astype(jnp.float32)   # biases added in f32 after the f32 accumulate
    b2k = b2.astype(jnp.float32)

    # Advisory cost estimate from LOGICAL dims (not padded ones).
    isz = jnp.dtype(in_dtype).itemsize
    flops = 2 * B * (d_in * d_hidden + d_hidden * d_out)
    bytes_accessed = (isz * (B * d_in + d_in * d_hidden + d_hidden * d_out)
                      + 4 * (B * d_out + d_hidden + d_out))

    out = pl.pallas_call(
        mlp_kernel,
        out_shape=jax.ShapeDtypeStruct((b8, d_out), jnp.float32),
        grid=grid,
        in_specs=[
            # x: streamed per batch block; feature dim is full-extent (no padding).
            pl.BlockSpec((tb, d_in), lambda i: (i, 0)),
            # weights/biases: constant index_map -> resident in VMEM across steps.
            pl.BlockSpec((d_in, d_hidden), lambda i: (0, 0)),
            pl.BlockSpec((1, d_hidden), lambda i: (0, 0)),
            pl.BlockSpec((d_hidden, d_out), lambda i: (0, 0)),
            pl.BlockSpec((1, d_out), lambda i: (0, 0)),
        ],
        # Output block is full-extent in the feature dim (d_out) — no 128 padding,
        # no post-kernel slice pass over a 32x inflated array.
        out_specs=pl.BlockSpec((tb, d_out), lambda i: (i, 0)),
        compiler_params=pltpu.CompilerParams(
            dimension_semantics=("parallel",),          # megacore sharding on v7x
            vmem_limit_bytes=32 * 1024 * 1024,
        ),
        cost_estimate=pl.CostEstimate(
            flops=flops, transcendentals=0, bytes_accessed=bytes_accessed),
    )(xk, w1k, b1k, w2k, b2k)

    return out[:B] if b8 != B else out


def init_mlp_params(key, d_in, d_hidden, d_out):
    # Mimic torch.nn.Linear default init: U(-1/sqrt(fan_in), 1/sqrt(fan_in)),
    # with deterministic JAX PRNG (synthetic weights, not a checkpoint).
    k1, k2, k3, k4 = jax.random.split(key, 4)
    bound1 = 1.0 / jnp.sqrt(jnp.float32(d_in))
    bound2 = 1.0 / jnp.sqrt(jnp.float32(d_hidden))
    # Stored as (in, out) = W.T relative to PyTorch's (out, in) layout.
    w1 = jax.random.uniform(k1, (d_in, d_hidden), jnp.float32, -bound1, bound1)
    b1 = jax.random.uniform(k2, (1, d_hidden), jnp.float32, -bound1, bound1)
    w2 = jax.random.uniform(k3, (d_hidden, d_out), jnp.float32, -bound2, bound2)
    b2 = jax.random.uniform(k4, (1, d_out), jnp.float32, -bound2, bound2)
    return w1, b1, w2, b2


if __name__ == "__main__":
    key = jax.random.PRNGKey(0)
    kx, kp = jax.random.split(key)

    B, D_IN, D_HIDDEN, D_OUT = 8, 16, 32, 4
    x = jax.random.normal(kx, (B, D_IN), jnp.float32)
    w1, b1, w2, b2 = init_mlp_params(kp, D_IN, D_HIDDEN, D_OUT)

    # Small single-block case (f32, bit-exact vs reference).
    out = mlp_forward(x, w1, b1, w2, b2)
    jax.block_until_ready(out)
    ref = jnp.maximum(x @ w1 + b1, 0.0) @ w2 + b2
    assert out.shape == (B, D_OUT)
    assert jnp.allclose(out, ref, atol=1e-5, rtol=1e-5)

    # Multi-block grid (grid >= 2 so the "parallel" batch axis shards on v7x).
    B2 = 2048
    x2 = jax.random.normal(jax.random.PRNGKey(1), (B2, D_IN), jnp.float32)
    out2 = mlp_forward(x2, w1, b1, w2, b2)
    jax.block_until_ready(out2)
    ref2 = jnp.maximum(x2 @ w1 + b1, 0.0) @ w2 + b2
    assert out2.shape == (B2, D_OUT)
    assert jnp.allclose(out2, ref2, atol=1e-5, rtol=1e-5)

    # Ragged batch: last grid block is partial (no full-tile batch rounding).
    B3 = 1000
    x3 = jax.random.normal(jax.random.PRNGKey(2), (B3, D_IN), jnp.float32)
    out3 = mlp_forward(x3, w1, b1, w2, b2)
    jax.block_until_ready(out3)
    ref3 = jnp.maximum(x3 @ w1 + b1, 0.0) @ w2 + b2
    assert out3.shape == (B3, D_OUT)
    assert jnp.allclose(out3, ref3, atol=1e-5, rtol=1e-5)

    # Optional bf16 streaming (f32 accumulate) — looser tolerance vs f32 reference.
    out_bf16 = mlp_forward(x2, w1, b1, w2, b2, use_bf16=True)
    jax.block_until_ready(out_bf16)
    assert jnp.allclose(out_bf16, ref2, atol=2e-1, rtol=5e-2)

    print("KERNEL_OK")
</pallas_src>

<mosaic_0001>
module attributes {stable_mosaic.version = 11 : i64} {
  func.func @mlp_kernel(%arg0: i32, %arg1: memref<8x16xf32, #tpu.memory_space<vmem>>, %arg2: memref<16x32xf32, #tpu.memory_space<vmem>>, %arg3: memref<1x32xf32, #tpu.memory_space<vmem>>, %arg4: memref<32x4xf32, #tpu.memory_space<vmem>>, %arg5: memref<1x4xf32, #tpu.memory_space<vmem>>, %arg6: memref<8x4xf32, #tpu.memory_space<vmem>>) attributes {dimension_semantics = [#tpu.dimension_semantics<parallel>], iteration_bounds = array<i64: 1>, scalar_prefetch = 0 : i64, scratch_operands = 0 : i64, tpu.core_type = #tpu.core_type<tc>, window_params = [{transform_indices = @transform_0, window_bounds = array<i64: 8, 16>}, {pipeline_mode = #tpu.pipeline_mode<synchronous>, transform_indices = @transform_1, window_bounds = array<i64: 16, 32>}, {pipeline_mode = #tpu.pipeline_mode<synchronous>, transform_indices = @transform_2, window_bounds = array<i64: 1, 32>}, {pipeline_mode = #tpu.pipeline_mode<synchronous>, transform_indices = @transform_3, window_bounds = array<i64: 32, 4>}, {pipeline_mode = #tpu.pipeline_mode<synchronous>, transform_indices = @transform_4, window_bounds = array<i64: 1, 4>}, {transform_indices = @transform_5, window_bounds = array<i64: 8, 4>}]} {
    %c0 = arith.constant 0 : index
    %c0_0 = arith.constant 0 : index
    %0 = vector.load %arg1[%c0, %c0_0] : memref<8x16xf32, #tpu.memory_space<vmem>>, vector<8x16xf32>
    %c0_1 = arith.constant 0 : index
    %c0_2 = arith.constant 0 : index
    %1 = vector.load %arg2[%c0_1, %c0_2] : memref<16x32xf32, #tpu.memory_space<vmem>>, vector<16x32xf32>
    %cst = arith.constant dense<0.000000e+00> : vector<8x32xf32>
    %2 = tpu.matmul %0, %1, %cst {dimension_numbers = #tpu.dot_dimension_numbers<[1], [0], [0], [1], [0, 0, 1, 1], [], []>} : vector<8x16xf32>, vector<16x32xf32>, vector<8x32xf32> -> vector<8x32xf32>
    %c0_3 = arith.constant 0 : index
    %c0_4 = arith.constant 0 : index
    %3 = vector.load %arg3[%c0_3, %c0_4] : memref<1x32xf32, #tpu.memory_space<vmem>>, vector<1x32xf32>
    %4 = vector.broadcast %3 : vector<1x32xf32> to vector<8x32xf32>
    %5 = arith.addf %2, %4 : vector<8x32xf32>
    %cst_5 = arith.constant 0.000000e+00 : f32
    %6 = vector.broadcast %cst_5 : f32 to vector<8x32xf32>
    %7 = arith.maximumf %5, %6 : vector<8x32xf32>
    %c0_6 = arith.constant 0 : index
    %c0_7 = arith.constant 0 : index
    %8 = vector.load %arg4[%c0_6, %c0_7] : memref<32x4xf32, #tpu.memory_space<vmem>>, vector<32x4xf32>
    %cst_8 = arith.constant dense<0.000000e+00> : vector<8x4xf32>
    %9 = tpu.matmul %7, %8, %cst_8 {dimension_numbers = #tpu.dot_dimension_numbers<[1], [0], [0], [1], [0, 0, 1, 1], [], []>} : vector<8x32xf32>, vector<32x4xf32>, vector<8x4xf32> -> vector<8x4xf32>
    %c0_9 = arith.constant 0 : index
    %c0_10 = arith.constant 0 : index
    %10 = vector.load %arg5[%c0_9, %c0_10] : memref<1x4xf32, #tpu.memory_space<vmem>>, vector<1x4xf32>
    %11 = vector.broadcast %10 : vector<1x4xf32> to vector<8x4xf32>
    %12 = arith.addf %9, %11 : vector<8x4xf32>
    %c0_11 = arith.constant 0 : index
    %c0_12 = arith.constant 0 : index
    %13 = vector.load %arg6[%c0_11, %c0_12] : memref<8x4xf32, #tpu.memory_space<vmem>>, vector<8x4xf32>
    tpu.vector_store %arg6[%c0_11, %c0_12], %12 {strides = array<i32>} : memref<8x4xf32, #tpu.memory_space<vmem>>, vector<8x4xf32>,
    return
  }
  func.func @transform_0(%arg0: i32) -> (i32, i32) {
    %c0_i32 = arith.constant 0 : i32
    %c0_i32_0 = arith.constant 0 : i32
    return %arg0, %c0_i32 : i32, i32
  }
  func.func @transform_1(%arg0: i32) -> (i32, i32) {
    %c0_i32 = arith.constant 0 : i32
    %c0_i32_0 = arith.constant 0 : i32
    %c0_i32_1 = arith.constant 0 : i32
    return %c0_i32, %c0_i32_0 : i32, i32
  }
  func.func @transform_2(%arg0: i32) -> (i32, i32) {
    %c0_i32 = arith.constant 0 : i32
    %c0_i32_0 = arith.constant 0 : i32
    %c0_i32_1 = arith.constant 0 : i32
    return %c0_i32, %c0_i32_0 : i32, i32
  }
  func.func @transform_3(%arg0: i32) -> (i32, i32) {
    %c0_i32 = arith.constant 0 : i32
    %c0_i32_0 = arith.constant 0 : i32
    %c0_i32_1 = arith.constant 0 : i32
    return %c0_i32, %c0_i32_0 : i32, i32
  }
  func.func @transform_4(%arg0: i32) -> (i32, i32) {
    %c0_i32 = arith.constant 0 : i32
    %c0_i32_0 = arith.constant 0 : i32
    %c0_i32_1 = arith.constant 0 : i32
    return %c0_i32, %c0_i32_0 : i32, i32
  }
  func.func @transform_5(%arg0: i32) -> (i32, i32) {
    %c0_i32 = arith.constant 0 : i32
    %c0_i32_0 = arith.constant 0 : i32
    return %arg0, %c0_i32 : i32, i32
  }
}

</mosaic_0001>

<bundles_post_ra>
// kernel: mlp_forward.1
= control target key start
LH: loop header
LB: loop body
LE: loop exit
PB: predicated region body
PF: predicated region fallthrough
CT: control target
= control target key end

     0   :  { %v228_v0 = vmov 0.0   ;;  %vm229_vm0 = vmmov 0   ;;  %vm30_vm1 = vcmask 130048   ;;  %vm116_vm2 = vcmask 261120   ;;  %s290_s1 = inlined_call_operand.vmem [shape: f32[16,32], index: 1, kind: input, shape index: {}]   ;;  %s291_s0 = inlined_call_operand.vmem [shape: f32[8,16], index: 0, kind: input, shape index: {}]   ;;  %s292_s3 = inlined_call_operand.vmem [shape: f32[32,4], index: 3, kind: input, shape index: {}]   ;;  %s293_s2 = inlined_call_operand.vmem [shape: f32[1,32], index: 2, kind: input, shape index: {}]   ;;  %s294_s4 = inlined_call_operand.vmem [shape: f32[1,4], index: 4, kind: input, shape index: {}]   ;;  %s295_s5 = inlined_call_operand.vmem [shape: f32[8,4], index: 5, kind: output, shape index: {}]  }
   0x1   :  { %208 = vmatprep.subr.mxu0 %v228_v0  ;;  %v22_v1 = vld [vmem:[%s290_s1 + $0x8] sm:$0xff]  ;;  %v21_v2 = vld [vmem:[%s290_s1] sm:$0xff]  ;;  %212 = vmatprep.mubr.msk.f32.mxu0 %vm229_vm0, %v228_v0  ;;  %v108_v4 = vld [vmem:[%s292_s3 + $0x18] sm:$0xff]  ;;  %vm190_vm3 = vcmask 31744  }
   0x2   :  { %209 = vmatpush3.msra.mxu0 %v22_v1  ;;  %v20_v3 = vld [vmem:[%s291_s0] sm:$0xff]  ;;  %215 = vmatprep.subr.mxu1 %v228_v0  ;;  %v107_v5 = vld [vmem:[%s292_s3 + $0x10] sm:$0xff]  ;;  %v106_v6 = vld [vmem:[%s292_s3 + $0x8] sm:$0xff] }
   0x3   :  { %210 = vmatprep.subr.mxu0 %v228_v0  ;;  %216 = vmatpush3.msra.mxu1 %v108_v4  ;;  %v105_v7 = vld [vmem:[%s292_s3] sm:$0xff] }
   0x4   :  { %211 = vmatpush3.msra.mxu0 %v21_v2  ;;  %217 = vmatprep.subr.mxu1 %v228_v0  ;;  %v196_v8 = vld [vmem:[%s293_s2] ss:$0 sm:$0xff] }
   0x5   :  { %213 = vmatmul.mubr.msk.f32.vlgmr.msra.gmra.mxu0 %vm30_vm1, %v20_v3  ;;  %223 = vmatprep.mubr.msk.f32.mxu1 %vm229_vm0, %v228_v0  ;;  %v198_v13 = vld [vmem:[%s294_s4] ss:$0 sm:$0xff] }
   0x6   :  { %218 = vmatpush3.msra.mxu1 %v107_v5 }
   0x7   :  { %219 = vmatprep.subr.mxu1 %v228_v0 }
   0x8   :  { %220 = vmatpush3.msra.mxu1 %v106_v6 }
   0x9   :  { %221 = vmatprep.subr.mxu1 %v228_v0 }
   0xa   :  { %222 = vmatpush3.msra.mxu1 %v105_v7 }
  0xc5   :  { %v100_v9 = vpop.f32.mrf.mxu0 }
  0xc6   :  { %v101_v10 = vadd.f32 %v196_v8, %v100_v9 }
  0xc7   :  { %v214_v11 = vpop.f32.mrf.mxu0 }
  0xc8   :  { %v104_v12 = vmax.f32 %v101_v10, 0.0 }
  0xca   :  { %224 = vmatmul.mubr.msk.f32.vlgmr.msra.gmra.mxu1 %vm116_vm2, %v104_v12 }
 0x18a   :  { %v186_v14 = vpop.f32.mrf.mxu1 }
 0x18b   :  { %v187_v15 = vadd.f32 %v198_v13, %v186_v14 }
 0x18c   :  { %v225_v16 = vpop.f32.mrf.mxu1 }
 0x18d   :  { %191 = vst.msk [vmem:[%s295_s5] sm:$0xff] %vm190_vm3, %v187_v15 }

</bundles_post_ra>
